<compile_context>
chip_gen: v6e
topology: v6e:2x2x1
jax: 0.10.0
libtpu: 0.0.40
codegen_flags: <defaults>
</compile_context>

<pallas_src>
import jax
import jax.numpy as jnp
from jax.experimental import pallas as pl
from jax.experimental.pallas import tpu as pltpu

_LANE = 128
_SUBLANE = 8


def _round_up(v: int, m: int) -> int:
    return ((v + m - 1) // m) * m


def _vmem_budgets() -> tuple:
    """(per-X-buffer target bytes, scoped VMEM limit bytes), gated on chip gen.

    v5e/v6e have 128 MiB VMEM per core -> bigger tiles / higher limit.
    v7x has only 64 MiB physical -> stay conservative (compiler scratch headroom).
    Falls back to the conservative setting if the hardware query is unavailable.
    """
    try:
        cap = int(getattr(pltpu.get_tpu_info(), "vmem_capacity_bytes", 0))
    except Exception:
        cap = 0
    if cap >= 100 * 1024 * 1024:  # v5e / v6e (128 MiB)
        return 12 * 1024 * 1024, 48 * 1024 * 1024
    return 6 * 1024 * 1024, 32 * 1024 * 1024  # v7x / unknown


def _choose_tile_b(batch: int, input_dim: int, x_buffer_bytes: int) -> int:
    """Largest batch tile whose *lane-padded* f32 slab fits the per-buffer target.

    A (tile_b, D) VMEM block occupies tile_b * round_up(D, 128) * 4 bytes,
    independent of the logical D, so account for the padding explicitly.
    """
    bytes_per_row = _round_up(max(1, input_dim), _LANE) * 4
    rows = max(_SUBLANE, x_buffer_bytes // bytes_per_row)
    # Prefer multiple-of-128 tiles (lane-dense output rows); floor at a sublane.
    if rows >= _LANE:
        rows = (rows // _LANE) * _LANE
    else:
        rows = (rows // _SUBLANE) * _SUBLANE
    # Never allocate a tile (much) bigger than the batch itself.
    rows = min(rows, _round_up(batch, _SUBLANE))
    # If the whole batch fits in one tile, split into >=2 tiles so the
    # "parallel" grid axis shards across both TensorCores on v7x (costs one
    # extra ~0.35us grid step on single-core chips -- negligible vs streaming).
    if batch > 2 * _LANE and rows >= _round_up(batch, _SUBLANE):
        rows = _round_up(pl.cdiv(batch, 2), _LANE)
    return max(_SUBLANE, rows)


def _svm_kernel(x_ref, w_ref, b_ref, o_ref):
    # x_ref: (TILE_B, D) VMEM     w_ref: (1, D) VMEM (resident across the grid)
    # b_ref: (1,) SMEM scalar     o_ref: (1, 1, TILE_B) VMEM, lane-dense
    # Contract w (1, D) with x (TILE_B, D) along D -> (1, TILE_B): the result
    # lands lane-major so the store is a full-lane (unmasked) vst, and compute
    # is trivially hidden under the X DMA.
    y = jax.lax.dot_general(
        w_ref[...],
        x_ref[...],
        dimension_numbers=(((1,), (1,)), ((), ())),
        preferred_element_type=jnp.float32,
    )  # (1, TILE_B) f32
    o_ref[0] = (y + b_ref[0]).astype(o_ref.dtype)


def svm_forward(x, weight, bias, *, tile_b=None):
    """Equivalent of nn.Linear(input_dim, 1): x @ weight.T + bias.

    x:      (B, D) float32 (bf16 also accepted: streamed narrow, f32 accumulate)
    weight: (1, D) float32   (PyTorch layout; NOT transposed)
    bias:   (1,)   float32
    returns (B, 1) in x.dtype
    """
    B, D = x.shape
    assert weight.shape == (1, D)
    x_buffer_bytes, vmem_limit = _vmem_budgets()
    if tile_b is None:
        tile_b = _choose_tile_b(B, D, x_buffer_bytes)
    tile_b = max(_SUBLANE, (int(tile_b) // _SUBLANE) * _SUBLANE)

    num_tiles = pl.cdiv(B, tile_b)

    weight = weight.astype(x.dtype)   # stream narrow if the caller sends bf16
    bias = bias.astype(jnp.float32)

    out = pl.pallas_call(
        _svm_kernel,
        out_shape=jax.ShapeDtypeStruct((num_tiles, 1, tile_b), x.dtype),
        grid_spec=pltpu.PrefetchScalarGridSpec(
            num_scalar_prefetch=0,
            grid=(num_tiles,),
            in_specs=[
                # X: batch-tiled -> double-buffered DMA overlapped with compute.
                # The ragged tail tile (B % tile_b != 0) is handled by Pallas;
                # its extra rows hold unspecified data and are sliced off below,
                # so no whole-array pad / extra HBM pass is needed.
                # (Optional sweep: pipeline_mode=pl.Buffered(3) for many tiles.)
                pl.BlockSpec((tile_b, D), lambda i: (i, 0)),
                # Weight row: constant block index -> stays resident in VMEM.
                pl.BlockSpec((1, D), lambda i: (0, 0)),
                # Bias: scalar in SMEM (no wasted (8,128) VMEM tile / DMA).
                pl.BlockSpec(memory_space=pltpu.MemorySpace.SMEM),
            ],
            # Lane-dense output: one (1, tile_b) row per grid step.
            out_specs=pl.BlockSpec((1, 1, tile_b), lambda i: (i, 0, 0)),
        ),
        compiler_params=pltpu.CompilerParams(
            # Independent batch tiles: shard across both TensorCores on v7x.
            dimension_semantics=("parallel",),
            vmem_limit_bytes=vmem_limit,
        ),
    )(x, weight, bias)

    # (num_tiles, 1, tile_b) -> (B, 1); drops the tail-tile padding rows.
    return out.reshape(num_tiles * tile_b)[:B].reshape(B, 1)


if __name__ == "__main__":
    key = jax.random.PRNGKey(0)
    kx, kw, kb = jax.random.split(key, 3)

    batch, input_dim = 8, 32
    x = jax.random.normal(kx, (batch, input_dim), dtype=jnp.float32)
    # Deterministic "Linear(input_dim, 1)" params (PyTorch layout).
    weight = jax.random.normal(kw, (1, input_dim), dtype=jnp.float32) * 0.1
    bias = jax.random.normal(kb, (1,), dtype=jnp.float32) * 0.1

    out = jax.block_until_ready(svm_forward(x, weight, bias))
    ref = x @ weight.T + bias
    assert out.shape == (batch, 1)
    assert jnp.allclose(out, ref, atol=1e-5, rtol=1e-5)

    # Exercise the multi-tile path with a ragged tail tile (no input pad):
    # batch=300, tile_b=128 -> grid of 3, last tile only partially valid.
    batch2 = 300
    x2 = jax.random.normal(kx, (batch2, input_dim), dtype=jnp.float32)
    out2 = jax.block_until_ready(svm_forward(x2, weight, bias, tile_b=128))
    ref2 = x2 @ weight.T + bias
    assert out2.shape == (batch2, 1)
    assert jnp.allclose(out2, ref2, atol=1e-5, rtol=1e-5)

    print("KERNEL_OK")
</pallas_src>

<mosaic_0001>
module attributes {stable_mosaic.version = 11 : i64} {
  func.func @_svm_kernel(%arg0: i32, %arg1: memref<8x32xf32, #tpu.memory_space<vmem>>, %arg2: memref<1x32xf32, #tpu.memory_space<vmem>>, %arg3: memref<1xf32, #tpu.memory_space<smem>>, %arg4: memref<1x1x8xf32, #tpu.memory_space<vmem>>) attributes {dimension_semantics = [#tpu.dimension_semantics<parallel>], iteration_bounds = array<i64: 1>, scalar_prefetch = 0 : i64, scratch_operands = 0 : i64, tpu.core_type = #tpu.core_type<tc>, window_params = [{transform_indices = @transform_0, window_bounds = array<i64: 8, 32>}, {pipeline_mode = #tpu.pipeline_mode<synchronous>, transform_indices = @transform_1, window_bounds = array<i64: 1, 32>}, {transform_indices = @transform_2, window_bounds = array<i64: 1>}, {transform_indices = @transform_3, window_bounds = array<i64: 1, 1, 8>}]} {
    %c0 = arith.constant 0 : index
    %c0_0 = arith.constant 0 : index
    %0 = vector.load %arg2[%c0, %c0_0] : memref<1x32xf32, #tpu.memory_space<vmem>>, vector<1x32xf32>
    %c0_1 = arith.constant 0 : index
    %c0_2 = arith.constant 0 : index
    %1 = vector.load %arg1[%c0_1, %c0_2] : memref<8x32xf32, #tpu.memory_space<vmem>>, vector<8x32xf32>
    %cst = arith.constant dense<0.000000e+00> : vector<1x8xf32>
    %2 = tpu.matmul %0, %1, %cst {dimension_numbers = #tpu.dot_dimension_numbers<[1], [1], [0], [0], [0, 0, 1, 0], [], []>} : vector<1x32xf32>, vector<8x32xf32>, vector<1x8xf32> -> vector<1x8xf32>
    %c0_3 = arith.constant 0 : index
    %3 = memref.load %arg3[%c0_3] : memref<1xf32, #tpu.memory_space<smem>>
    %4 = vector.broadcast %3 : f32 to vector<1x8xf32>
    %5 = arith.addf %2, %4 : vector<1x8xf32>
    %c0_4 = arith.constant 0 : index
    %c0_5 = arith.constant 0 : index
    %c0_6 = arith.constant 0 : index
    %6 = vector.load %arg4[%c0_4, %c0_5, %c0_6] : memref<1x1x8xf32, #tpu.memory_space<vmem>>, vector<1x1x8xf32>
    %7 = vector.shape_cast %6 : vector<1x1x8xf32> to vector<1x8xf32>
    %8 = vector.shape_cast %5 : vector<1x8xf32> to vector<1x1x8xf32>
    tpu.vector_store %arg4[%c0_4, %c0_5, %c0_6], %8 {strides = array<i32>} : memref<1x1x8xf32, #tpu.memory_space<vmem>>, vector<1x1x8xf32>,
    return
  }
  func.func @transform_0(%arg0: i32) -> (i32, i32) {
    %c0_i32 = arith.constant 0 : i32
    %c0_i32_0 = arith.constant 0 : i32
    return %arg0, %c0_i32 : i32, i32
  }
  func.func @transform_1(%arg0: i32) -> (i32, i32) {
    %c0_i32 = arith.constant 0 : i32
    %c0_i32_0 = arith.constant 0 : i32
    %c0_i32_1 = arith.constant 0 : i32
    return %c0_i32, %c0_i32_0 : i32, i32
  }
  func.func @transform_2(%arg0: i32) -> i32 {
    %c0_i32 = arith.constant 0 : i32
    %c0_i32_0 = arith.constant 0 : i32
    return %c0_i32 : i32
  }
  func.func @transform_3(%arg0: i32) -> (i32, i32, i32) {
    %c0_i32 = arith.constant 0 : i32
    %c0_i32_0 = arith.constant 0 : i32
    %c0_i32_1 = arith.constant 0 : i32
    return %arg0, %c0_i32, %c0_i32_0 : i32, i32, i32
  }
}

</mosaic_0001>

<bundles_post_ra>
// kernel: tpu_custom_call.1
= control target key start
LH: loop header
LB: loop body
LE: loop exit
PB: predicated region body
PF: predicated region fallthrough
CT: control target
= control target key end

     0   :  { %9 = vsyncpa [#allocation4], 0  ;;  %s219_s0 = inlined_call_operand.hbm [shape: f32[8,32], index: 0, kind: input, shape index: {}]   ;;  %s220_s1 = inlined_call_operand.vmem [shape: f32[1,32], index: 1, kind: input, shape index: {}]   ;;  %s221_s2 = inlined_call_operand.<no memory space> [shape: f32[1], index: 2, kind: input, shape index: {}]   ;;  %s222_s3 = inlined_call_operand.hbm [shape: f32[1,1,8], index: 3, kind: output, shape index: {}]  }
   0x1   :  { %10 = vsyncpa [#allocation5], 0  ;;  %s183_s12 = smov [#allocation3]  }
   0x2   :  { %s17_s13 = sshll.u32 %s183_s12, 4  ;;  %s18_s13 = int_to_ptr.vmem [resolvable:$true] %s17_s13 }
   0x3   :  { %s147_s14 = scalar_lea.vmem %s18_s13, 128  ;;  %p152_p1 = scmp.lt.s32.totalorder %s18_s13, %s18_s13 }
   0x4   :  { %p148_p0 = scmp.ne.s32.totalorder %s18_s13, %s147_s14  ;;  %p153_p2 = scmp.lt.s32.totalorder %s147_s14, %s147_s14 }
   0x6   :  { %p154_p3 = por %p153_p2, %p152_p1 }
   0x8   :  { %p155_p4 = pnand %p154_p3, %p148_p0 }
   0xa   :  { %158 = shalt.err (!%p155_p4)
}
   0xb   :  { %20 = dma.hbm_to_vmem [thread:$0]  %s219_s0, 128, %s18_s13, [#allocation4]  }
   0xc   :  { %179 = dma.done.wait [#allocation4], 128  }
   0xd   :  { %180 = vsyncadd [#allocation4], 4294967168  ;;  %v184_v0 = vmov 0.0   ;;  %vm185_vm0 = vmmov 0   ;;  %vm32_vm1 = vcmask 261120   ;;  %v29_v1 = vld [vmem:[#allocation3] sm:$0xff]  ;;  %v31_v3 = vstv %s221_s2 }
   0xe   :  { %130 = vmatprep.subr.mxu0 %v184_v0  ;;  %132 = vmatprep.mubr.msk.f32.mxu0 %vm185_vm0, %v184_v0  ;;  %v28_v2 = vld [vmem:[%s220_s1] sm:$0x1]  ;;  %s186_s21 = smov [#allocation6]   ;;  %vm109_vm2 = vcmask 57344  }
   0xf   :  { %131 = vmatpush3.xpose.msk.msra.mxu0 %vm32_vm1, %v29_v1  ;;  %s117_s0 = sshll.u32 %s186_s21, 4  ;;  %s118_s0 = int_to_ptr.vmem [resolvable:$true] %s117_s0 }
  0x10   :  { %s159_s22 = scalar_lea.vmem %s118_s0, 16  ;;  %s163_s23 = scalar_lea.vmem %s118_s0, 32 }
  0x11   :  { %p160_p5 = scmp.ne.s32.totalorder %s118_s0, %s159_s22  ;;  %p164_p6 = scmp.lt.s32.totalorder %s118_s0, %s118_s0 }
  0x12   :  { %133 = vmatmul.mubr.msk.f32.vlgmr.msra.gmra.mxu0 %vm32_vm1, %v28_v2  ;;  %p165_p7 = scmp.lt.s32.totalorder %s163_s23, %s159_s22 }
  0x14   :  { %p166_p8 = por %p165_p7, %p164_p6 }
  0x16   :  { %p167_p9 = pnand %p166_p8, %p160_p5 }
  0xd2   :  { %v105_v4 = vpop.f32.mrf.mxu0 }
  0xd3   :  { %v106_v5 = vadd.f32 %v105_v4, %v31_v3 }
  0xd4   :  { %v134_v6 = vpop.f32.mrf.mxu0 }
  0xd5   :  { %110 = vst.msk [vmem:[#allocation6] sm:$0x1] %vm109_vm2, %v106_v5 }
  0xd6   :  { %170 = shalt.err (!%p167_p9)
}
  0xd7   :  { %120 = dma.vmem_to_hbm [thread:$0]  %s118_s0, 16, %s222_s3, [#allocation5]  }
  0xd8   :  { %181 = dma.done.wait [#allocation5], 16  }
  0xd9   :  { %182 = vsyncadd [#allocation5], 4294967280 }
  0xda   :  { %124 = vsyncpa [#allocation4], 1 }
  0xdb   :  { %125 = vsyncpa [#allocation5], 1 }

</bundles_post_ra>
